<compile_context>
chip_gen: v7x
topology: tpu7x:2x2x1
jax: 0.10.0
libtpu: 0.0.40
codegen_flags: <defaults>
</compile_context>

<pallas_src>
import math

import jax
import jax.numpy as jnp
from jax import lax
from jax.experimental import pallas as pl
from jax.experimental.pallas import tpu as pltpu

NUM_CLASSES = 10
IN_FEATURES = 28 * 28
LANE = 128            # lane-dense width every layer is padded to
MAX_TILE_B = 1024     # upper bound on the batch tile (amortizes grid-step cost)

LAYER_DIMS = [(IN_FEATURES, 64), (64, 120), (120, 120), (120, 64), (64, NUM_CLASSES)]
NUM_HIDDEN_W = len(LAYER_DIMS) - 1   # the four 128x128 (padded) weights after W1


def mlp_kernel(x_ref, w1_ref, wh_ref, b_ref, o_ref):
    """One (tile_b, 784) f32 batch tile -> (tile_b, 128) f32 log-probs.
    Real classes live in lanes 0..9; padded lanes are written as 0.0."""
    # Cast to bf16 per-tile for the MXU; accumulate in f32.
    x = x_ref[...].astype(jnp.bfloat16)

    h = jnp.dot(x, w1_ref[...], preferred_element_type=jnp.float32)
    h = jnp.maximum(h + b_ref[0, :], 0.0)

    for i in range(NUM_HIDDEN_W - 1):            # layers 2..4 (ReLU)
        h = jnp.dot(h.astype(jnp.bfloat16), wh_ref[i],
                    preferred_element_type=jnp.float32)
        h = jnp.maximum(h + b_ref[i + 1, :], 0.0)

    logits = jnp.dot(h.astype(jnp.bfloat16), wh_ref[NUM_HIDDEN_W - 1],
                     preferred_element_type=jnp.float32)
    logits = logits + b_ref[NUM_HIDDEN_W, :]

    # Mask the zero-padded class lanes so they do not contribute to the softmax.
    col = lax.broadcasted_iota(jnp.int32, logits.shape, 1)
    logits = jnp.where(col < NUM_CLASSES, logits, -jnp.inf)

    # Numerically stable log_softmax over the class axis (f32).
    m = jnp.max(logits, axis=-1, keepdims=True)
    shifted = logits - m
    lse = jnp.log(jnp.sum(jnp.exp(shifted), axis=-1, keepdims=True))
    logprobs = shifted - lse

    # Write zeros (not -inf) to the padded lanes so the lane-padded output is
    # safe for consumers that reduce over it without slicing first.
    o_ref[...] = jnp.where(col < NUM_CLASSES, logprobs, 0.0)


def _pad_to(a, shape):
    pads = [(0, t - s) for s, t in zip(a.shape, shape)]
    return jnp.pad(a, pads)


def prepare_params(params):
    """Cast weights to bf16 and zero-pad every layer width to 128 lanes.
    Returns (w1, wh_stack, bias_stack):
      w1:  (784, 128) bf16
      wh:  (4, 128, 128) bf16  (fc2..fc5, zero-padded)
      b:   (5, 128)   f32      (fc1..fc5 biases, zero-padded)"""
    (w1, _) = params[0]
    w1_p = _pad_to(w1, (IN_FEATURES, LANE)).astype(jnp.bfloat16)
    wh = jnp.stack([_pad_to(w, (LANE, LANE)).astype(jnp.bfloat16)
                    for (w, _) in params[1:]])
    b = jnp.stack([_pad_to(bi.reshape(-1), (LANE,)).astype(jnp.float32)
                   for (_, bi) in params])
    return w1_p, wh, b


def _choose_tile_b(batch):
    """Pick a batch tile: big enough to amortize per-grid-step overhead, small
    enough that large batches produce >= 2 grid steps (v7x has 2 TCs)."""
    padded = max(8, ((batch + 7) // 8) * 8)
    if padded <= LANE:
        return padded                       # one small tile; grid of 1
    half = (padded + 1) // 2
    tile = ((half + LANE - 1) // LANE) * LANE
    return min(MAX_TILE_B, max(LANE, tile))


def net_forward_padded(x, params, tile_b=None):
    """Runs the MLP. Returns the lane-padded (batch_pad, 128) f32 log-prob
    block (real classes in lanes 0..9, zeros elsewhere, zero-padded batch rows
    hold garbage-but-finite values). Slicing is left to the consumer."""
    batch = x.shape[0]
    if tile_b is None:
        tile_b = _choose_tile_b(batch)
    grid_b = pl.cdiv(batch, tile_b)
    batch_pad = grid_b * tile_b

    # Only pad (f32, no cast) if the batch is not already tile-aligned.
    x_in = x if batch == batch_pad else _pad_to(x, (batch_pad, IN_FEATURES))
    x_in = x_in.astype(jnp.float32)

    w1, wh, b = prepare_params(params)

    # x / out tiles stream over the grid; weights & biases have constant block
    # indices -> loaded once and kept resident in VMEM.
    x_spec = pl.BlockSpec((tile_b, IN_FEATURES), lambda i: (i, 0))
    w1_spec = pl.BlockSpec((IN_FEATURES, LANE), lambda i: (0, 0))
    wh_spec = pl.BlockSpec((NUM_HIDDEN_W, LANE, LANE), lambda i: (0, 0, 0))
    b_spec = pl.BlockSpec((len(LAYER_DIMS), LANE), lambda i: (0, 0))
    out_spec = pl.BlockSpec((tile_b, LANE), lambda i: (i, 0))

    flops = 2 * batch_pad * (IN_FEATURES * LANE + NUM_HIDDEN_W * LANE * LANE)
    bytes_accessed = (x_in.size * 4
                      + w1.size * 2 + wh.size * 2 + b.size * 4
                      + batch_pad * LANE * 4)
    cost = pl.CostEstimate(flops=flops,
                           transcendentals=batch_pad * (LANE + 1),
                           bytes_accessed=bytes_accessed)

    out_padded = pl.pallas_call(
        mlp_kernel,
        out_shape=jax.ShapeDtypeStruct((batch_pad, LANE), jnp.float32),
        grid=(grid_b,),
        in_specs=[x_spec, w1_spec, wh_spec, b_spec],
        out_specs=out_spec,
        compiler_params=pltpu.CompilerParams(
            dimension_semantics=("parallel",)),
        cost_estimate=cost,
    )(x_in, w1, wh, b)
    return out_padded


def net_forward(x, params, tile_b=None):
    """Convenience wrapper matching the PyTorch module's (batch, 10) output."""
    out_padded = net_forward_padded(x, params, tile_b=tile_b)
    return out_padded[:x.shape[0], :NUM_CLASSES]


def init_params(key):
    """Deterministic init mimicking nn.Linear's Kaiming-uniform default.
    Weights are (in_features, out_features); biases are (out_features,)."""
    params = []
    for (fan_in, fan_out) in LAYER_DIMS:
        key, kw, kb = jax.random.split(key, 3)
        bound = 1.0 / math.sqrt(fan_in)
        w = jax.random.uniform(kw, (fan_in, fan_out), jnp.float32,
                               minval=-bound, maxval=bound)
        b = jax.random.uniform(kb, (fan_out,), jnp.float32,
                               minval=-bound, maxval=bound)
        params.append((w, b))
    return params


def reference_forward_f32(x, params):
    """Pure-f32 equivalent of the PyTorch forward."""
    h = x
    for (w, b) in params[:-1]:
        h = jnp.maximum(h @ w + b, 0.0)
    w5, b5 = params[-1]
    logits = h @ w5 + b5
    return jax.nn.log_softmax(logits, axis=-1)


def reference_forward_bf16(x, params):
    """Same precision recipe as the kernel: bf16 matmul operands, f32 accumulate,
    f32 elementwise."""
    h = x.astype(jnp.bfloat16)
    for (w, b) in params[:-1]:
        y = jnp.dot(h, w.astype(jnp.bfloat16),
                    preferred_element_type=jnp.float32) + b
        h = jnp.maximum(y, 0.0).astype(jnp.bfloat16)
    w5, b5 = params[-1]
    logits = jnp.dot(h, w5.astype(jnp.bfloat16),
                     preferred_element_type=jnp.float32) + b5
    return jax.nn.log_softmax(logits, axis=-1)


if __name__ == "__main__":
    key = jax.random.PRNGKey(0)
    key, kx = jax.random.split(key)

    batch = 8
    x = jax.random.normal(kx, (batch, IN_FEATURES), jnp.float32)
    params = init_params(key)

    out_padded = net_forward_padded(x, params)
    out_padded = jax.block_until_ready(out_padded)
    assert out_padded.shape[1] == LANE

    out = out_padded[:batch, :NUM_CLASSES]
    assert out.shape == (batch, NUM_CLASSES)

    # Padded class lanes must be finite zeros (safe for downstream reductions).
    assert bool(jnp.all(out_padded[:batch, NUM_CLASSES:] == 0.0)), "padded lanes not zero"

    # Kernel-implementation check against a matching-precision JAX reference.
    ref_bf16 = reference_forward_bf16(x, params)
    assert jnp.allclose(out, ref_bf16, atol=1e-3, rtol=1e-3), "mismatch vs bf16 reference"

    # Semantic check against the pure-f32 PyTorch-equivalent forward.
    ref_f32 = reference_forward_f32(x, params)
    assert jnp.allclose(out, ref_f32, atol=5e-2, rtol=5e-2), "mismatch vs f32 reference"

    print("KERNEL_OK")
</pallas_src>

<mosaic_0001>
module attributes {stable_mosaic.version = 11 : i64} {
  func.func @mlp_kernel(%arg0: i32, %arg1: memref<8x784xf32, #tpu.memory_space<vmem>>, %arg2: memref<784x128xbf16, #tpu.memory_space<vmem>>, %arg3: memref<4x128x128xbf16, #tpu.memory_space<vmem>>, %arg4: memref<5x128xf32, #tpu.memory_space<vmem>>, %arg5: memref<8x128xf32, #tpu.memory_space<vmem>>) attributes {dimension_semantics = [#tpu.dimension_semantics<parallel>], iteration_bounds = array<i64: 1>, scalar_prefetch = 0 : i64, scratch_operands = 0 : i64, tpu.core_type = #tpu.core_type<tc>, window_params = [{transform_indices = @transform_0, window_bounds = array<i64: 8, 784>}, {pipeline_mode = #tpu.pipeline_mode<synchronous>, transform_indices = @transform_1, window_bounds = array<i64: 784, 128>}, {pipeline_mode = #tpu.pipeline_mode<synchronous>, transform_indices = @transform_2, window_bounds = array<i64: 4, 128, 128>}, {pipeline_mode = #tpu.pipeline_mode<synchronous>, transform_indices = @transform_3, window_bounds = array<i64: 5, 128>}, {transform_indices = @transform_4, window_bounds = array<i64: 8, 128>}]} {
    %c0 = arith.constant 0 : index
    %c0_0 = arith.constant 0 : index
    %0 = vector.load %arg1[%c0, %c0_0] : memref<8x784xf32, #tpu.memory_space<vmem>>, vector<8x784xf32>
    %1 = arith.truncf %0 : vector<8x784xf32> to vector<8x784xbf16>
    %c0_1 = arith.constant 0 : index
    %c0_2 = arith.constant 0 : index
    %2 = vector.load %arg2[%c0_1, %c0_2] : memref<784x128xbf16, #tpu.memory_space<vmem>>, vector<784x128xbf16>
    %cst = arith.constant dense<0.000000e+00> : vector<8x128xf32>
    %3 = tpu.matmul %1, %2, %cst {dimension_numbers = #tpu.dot_dimension_numbers<[1], [0], [0], [1], [0, 0, 1, 1], [], []>} : vector<8x784xbf16>, vector<784x128xbf16>, vector<8x128xf32> -> vector<8x128xf32>
    %c0_3 = arith.constant 0 : index
    %c0_4 = arith.constant 0 : index
    %4 = vector.load %arg4[%c0_3, %c0_4] : memref<5x128xf32, #tpu.memory_space<vmem>>, vector<1x128xf32>
    %5 = vector.shape_cast %4 : vector<1x128xf32> to vector<128xf32>
    %6 = vector.shape_cast %5 : vector<128xf32> to vector<1x128xf32>
    %7 = vector.broadcast %6 : vector<1x128xf32> to vector<8x128xf32>
    %8 = arith.addf %3, %7 : vector<8x128xf32>
    %cst_5 = arith.constant 0.000000e+00 : f32
    %9 = vector.broadcast %cst_5 : f32 to vector<8x128xf32>
    %10 = arith.maximumf %8, %9 : vector<8x128xf32>
    %11 = arith.truncf %10 : vector<8x128xf32> to vector<8x128xbf16>
    %c0_6 = arith.constant 0 : index
    %c0_7 = arith.constant 0 : index
    %c0_8 = arith.constant 0 : index
    %12 = vector.load %arg3[%c0_6, %c0_7, %c0_8] : memref<4x128x128xbf16, #tpu.memory_space<vmem>>, vector<1x128x128xbf16>
    %13 = vector.shape_cast %12 : vector<1x128x128xbf16> to vector<128x128xbf16>
    %cst_9 = arith.constant dense<0.000000e+00> : vector<8x128xf32>
    %14 = tpu.matmul %11, %13, %cst_9 {dimension_numbers = #tpu.dot_dimension_numbers<[1], [0], [0], [1], [0, 0, 1, 1], [], []>} : vector<8x128xbf16>, vector<128x128xbf16>, vector<8x128xf32> -> vector<8x128xf32>
    %c1 = arith.constant 1 : index
    %c0_10 = arith.constant 0 : index
    %15 = vector.load %arg4[%c1, %c0_10] : memref<5x128xf32, #tpu.memory_space<vmem>>, vector<1x128xf32>
    %16 = vector.shape_cast %15 : vector<1x128xf32> to vector<128xf32>
    %17 = vector.shape_cast %16 : vector<128xf32> to vector<1x128xf32>
    %18 = vector.broadcast %17 : vector<1x128xf32> to vector<8x128xf32>
    %19 = arith.addf %14, %18 : vector<8x128xf32>
    %cst_11 = arith.constant 0.000000e+00 : f32
    %20 = vector.broadcast %cst_11 : f32 to vector<8x128xf32>
    %21 = arith.maximumf %19, %20 : vector<8x128xf32>
    %22 = arith.truncf %21 : vector<8x128xf32> to vector<8x128xbf16>
    %c1_12 = arith.constant 1 : index
    %c0_13 = arith.constant 0 : index
    %c0_14 = arith.constant 0 : index
    %23 = vector.load %arg3[%c1_12, %c0_13, %c0_14] : memref<4x128x128xbf16, #tpu.memory_space<vmem>>, vector<1x128x128xbf16>
    %24 = vector.shape_cast %23 : vector<1x128x128xbf16> to vector<128x128xbf16>
    %cst_15 = arith.constant dense<0.000000e+00> : vector<8x128xf32>
    %25 = tpu.matmul %22, %24, %cst_15 {dimension_numbers = #tpu.dot_dimension_numbers<[1], [0], [0], [1], [0, 0, 1, 1], [], []>} : vector<8x128xbf16>, vector<128x128xbf16>, vector<8x128xf32> -> vector<8x128xf32>
    %c2 = arith.constant 2 : index
    %c0_16 = arith.constant 0 : index
    %26 = vector.load %arg4[%c2, %c0_16] : memref<5x128xf32, #tpu.memory_space<vmem>>, vector<1x128xf32>
    %27 = vector.shape_cast %26 : vector<1x128xf32> to vector<128xf32>
    %28 = vector.shape_cast %27 : vector<128xf32> to vector<1x128xf32>
    %29 = vector.broadcast %28 : vector<1x128xf32> to vector<8x128xf32>
    %30 = arith.addf %25, %29 : vector<8x128xf32>
    %cst_17 = arith.constant 0.000000e+00 : f32
    %31 = vector.broadcast %cst_17 : f32 to vector<8x128xf32>
    %32 = arith.maximumf %30, %31 : vector<8x128xf32>
    %33 = arith.truncf %32 : vector<8x128xf32> to vector<8x128xbf16>
    %c2_18 = arith.constant 2 : index
    %c0_19 = arith.constant 0 : index
    %c0_20 = arith.constant 0 : index
    %34 = vector.load %arg3[%c2_18, %c0_19, %c0_20] : memref<4x128x128xbf16, #tpu.memory_space<vmem>>, vector<1x128x128xbf16>
    %35 = vector.shape_cast %34 : vector<1x128x128xbf16> to vector<128x128xbf16>
    %cst_21 = arith.constant dense<0.000000e+00> : vector<8x128xf32>
    %36 = tpu.matmul %33, %35, %cst_21 {dimension_numbers = #tpu.dot_dimension_numbers<[1], [0], [0], [1], [0, 0, 1, 1], [], []>} : vector<8x128xbf16>, vector<128x128xbf16>, vector<8x128xf32> -> vector<8x128xf32>
    %c3 = arith.constant 3 : index
    %c0_22 = arith.constant 0 : index
    %37 = vector.load %arg4[%c3, %c0_22] : memref<5x128xf32, #tpu.memory_space<vmem>>, vector<1x128xf32>
    %38 = vector.shape_cast %37 : vector<1x128xf32> to vector<128xf32>
    %39 = vector.shape_cast %38 : vector<128xf32> to vector<1x128xf32>
    %40 = vector.broadcast %39 : vector<1x128xf32> to vector<8x128xf32>
    %41 = arith.addf %36, %40 : vector<8x128xf32>
    %cst_23 = arith.constant 0.000000e+00 : f32
    %42 = vector.broadcast %cst_23 : f32 to vector<8x128xf32>
    %43 = arith.maximumf %41, %42 : vector<8x128xf32>
    %44 = arith.truncf %43 : vector<8x128xf32> to vector<8x128xbf16>
    %c3_24 = arith.constant 3 : index
    %c0_25 = arith.constant 0 : index
    %c0_26 = arith.constant 0 : index
    %45 = vector.load %arg3[%c3_24, %c0_25, %c0_26] : memref<4x128x128xbf16, #tpu.memory_space<vmem>>, vector<1x128x128xbf16>
    %46 = vector.shape_cast %45 : vector<1x128x128xbf16> to vector<128x128xbf16>
    %cst_27 = arith.constant dense<0.000000e+00> : vector<8x128xf32>
    %47 = tpu.matmul %44, %46, %cst_27 {dimension_numbers = #tpu.dot_dimension_numbers<[1], [0], [0], [1], [0, 0, 1, 1], [], []>} : vector<8x128xbf16>, vector<128x128xbf16>, vector<8x128xf32> -> vector<8x128xf32>
    %c4 = arith.constant 4 : index
    %c0_28 = arith.constant 0 : index
    %48 = vector.load %arg4[%c4, %c0_28] : memref<5x128xf32, #tpu.memory_space<vmem>>, vector<1x128xf32>
    %49 = vector.shape_cast %48 : vector<1x128xf32> to vector<128xf32>
    %50 = vector.shape_cast %49 : vector<128xf32> to vector<1x128xf32>
    %51 = vector.broadcast %50 : vector<1x128xf32> to vector<8x128xf32>
    %52 = arith.addf %47, %51 : vector<8x128xf32>
    %53 = tpu.iota {dimensions = array<i32: 1>} : vector<8x128xi32>
    %c10_i32 = arith.constant 10 : i32
    %54 = vector.broadcast %c10_i32 : i32 to vector<8x128xi32>
    %55 = arith.cmpi slt, %53, %54 : vector<8x128xi32>
    %cst_29 = arith.constant 0xFF800000 : f32
    %56 = vector.broadcast %cst_29 : f32 to vector<8x128xf32>
    %57 = arith.select %55, %52, %56 : vector<8x128xi1>, vector<8x128xf32>
    %cst_30 = arith.constant dense<0xFF800000> : vector<8xf32>
    %58 = vector.multi_reduction <maximumf>, %57, %cst_30 [1] : vector<8x128xf32> to vector<8xf32>
    %59 = vector.shape_cast %58 : vector<8xf32> to vector<8x1xf32>
    %60 = vector.broadcast %59 : vector<8x1xf32> to vector<8x128xf32>
    %61 = arith.subf %57, %60 : vector<8x128xf32>
    %62 = math.exp %61 : vector<8x128xf32>
    %cst_31 = arith.constant dense<0.000000e+00> : vector<8xf32>
    %63 = vector.multi_reduction <add>, %62, %cst_31 [1] : vector<8x128xf32> to vector<8xf32>
    %64 = vector.shape_cast %63 : vector<8xf32> to vector<8x1xf32>
    %65 = math.log %64 : vector<8x1xf32>
    %66 = vector.broadcast %65 : vector<8x1xf32> to vector<8x128xf32>
    %67 = arith.subf %61, %66 : vector<8x128xf32>
    %c10_i32_32 = arith.constant 10 : i32
    %68 = vector.broadcast %c10_i32_32 : i32 to vector<8x128xi32>
    %69 = arith.cmpi slt, %53, %68 : vector<8x128xi32>
    %cst_33 = arith.constant 0.000000e+00 : f32
    %70 = vector.broadcast %cst_33 : f32 to vector<8x128xf32>
    %71 = arith.select %69, %67, %70 : vector<8x128xi1>, vector<8x128xf32>
    %c0_34 = arith.constant 0 : index
    %c0_35 = arith.constant 0 : index
    %72 = vector.load %arg5[%c0_34, %c0_35] : memref<8x128xf32, #tpu.memory_space<vmem>>, vector<8x128xf32>
    tpu.vector_store %arg5[%c0_34, %c0_35], %71 {strides = array<i32>} : memref<8x128xf32, #tpu.memory_space<vmem>>, vector<8x128xf32>,
    return
  }
  func.func @transform_0(%arg0: i32) -> (i32, i32) {
    %c0_i32 = arith.constant 0 : i32
    %c0_i32_0 = arith.constant 0 : i32
    return %arg0, %c0_i32 : i32, i32
  }
  func.func @transform_1(%arg0: i32) -> (i32, i32) {
    %c0_i32 = arith.constant 0 : i32
    %c0_i32_0 = arith.constant 0 : i32
    %c0_i32_1 = arith.constant 0 : i32
    return %c0_i32, %c0_i32_0 : i32, i32
  }
  func.func @transform_2(%arg0: i32) -> (i32, i32, i32) {
    %c0_i32 = arith.constant 0 : i32
    %c0_i32_0 = arith.constant 0 : i32
    %c0_i32_1 = arith.constant 0 : i32
    %c0_i32_2 = arith.constant 0 : i32
    return %c0_i32, %c0_i32_0, %c0_i32_1 : i32, i32, i32
  }
  func.func @transform_3(%arg0: i32) -> (i32, i32) {
    %c0_i32 = arith.constant 0 : i32
    %c0_i32_0 = arith.constant 0 : i32
    %c0_i32_1 = arith.constant 0 : i32
    return %c0_i32, %c0_i32_0 : i32, i32
  }
  func.func @transform_4(%arg0: i32) -> (i32, i32) {
    %c0_i32 = arith.constant 0 : i32
    %c0_i32_0 = arith.constant 0 : i32
    return %arg0, %c0_i32 : i32, i32
  }
}

</mosaic_0001>

<bundles_post_ra>
// kernel: tpu_custom_call.1
= control target key start
LH: loop header
LB: loop body
LE: loop exit
PB: predicated region body
PF: predicated region fallthrough
CT: control target
= control target key end

     0   :  { %9 = vsyncpa [#allocation3], 0  ;;  %s1723_s0 = inlined_call_operand.hbm [shape: f32[8,784], index: 0, kind: input, shape index: {}]   ;;  %s1724_s1 = inlined_call_operand.hbm [shape: bf16[784,128], index: 1, kind: input, shape index: {}]   ;;  %s1725_s2 = inlined_call_operand.hbm [shape: bf16[4,128,128], index: 2, kind: input, shape index: {}]   ;;  %s1726_s3 = inlined_call_operand.vmem [shape: f32[5,128], index: 3, kind: input, shape index: {}]   ;;  %s1727_s4 = inlined_call_operand.hbm [shape: f32[8,128], index: 4, kind: output, shape index: {}]  }
   0x1   :  { %10 = vsyncpa [#allocation6], 0 }
   0x2   :  { %11 = vsyncpa [#allocation4], 0  ;;  %s1576_s15 = smov [#allocation5]   ;;  %s1482_s19 = scalar_lea.hbm %s1724_s1, 6272 }
   0x3   :  { %s27_s16 = sshll.u32 %s1576_s15, 4  ;;  %p1483_p0 = scmp.ne.s32.totalorder %s1724_s1, %s1482_s19  ;;  %s28_s16 = int_to_ptr.vmem [resolvable:$true] %s27_s16 }
   0x4   :  { %p1486_p1 = scmp.lt.u32.totalorder %s1482_s19, %s1724_s1 }
   0x6   :  { %p1488_p2 = pnand %p1486_p1, %p1483_p0 }
   0x8   :  { %1491 = shalt.err (!%p1488_p2)
}
   0x9   :  { %s1492_s24 = scalar_lea.vmem %s28_s16, 6272  ;;  %p1497_p4 = scmp.lt.s32.totalorder %s28_s16, %s28_s16 }
   0xa   :  { %p1493_p3 = scmp.ne.s32.totalorder %s28_s16, %s1492_s24  ;;  %p1498_p5 = scmp.lt.s32.totalorder %s1492_s24, %s1492_s24 }
   0xc   :  { %p1499_p6 = por %p1498_p5, %p1497_p4 }
   0xe   :  { %p1500_p7 = pnand %p1499_p6, %p1493_p3 }
  0x10   :  { %1503 = shalt.err (!%p1500_p7)
}
  0x11   :  { %s1577_s25 = smov 64   ;;  %s1578_s26 = smov 4  }
  0x12   :  { %33 = dma.hbm_to_vmem [thread:$0]  %s1724_s1, 6272, %s28_s16, [#allocation6], %s1577_s25, %s1577_s25, %s1578_s26  }
  0x13   :  { %s1579_s29 = smov [#allocation2]   ;;  %s1580_s5 = smov [#allocation7]  }
  0x14   :  { %s18_s30 = sshll.u32 %s1579_s29, 4  ;;  %s39_s6 = sshll.u32 %s1580_s5, 4  ;;  %s19_s30 = int_to_ptr.vmem [resolvable:$true] %s18_s30  ;;  %s40_s6 = int_to_ptr.vmem [resolvable:$true] %s39_s6 }
  0x15   :  { %s1504_s9 = scalar_lea.hbm %s1723_s0, 896 }
  0x16   :  { %p1505_p8 = scmp.ne.s32.totalorder %s1723_s0, %s1504_s9  ;;  %p1508_p9 = scmp.lt.u32.totalorder %s1504_s9, %s1723_s0 }
  0x18   :  { %p1510_p10 = pnand %p1508_p9, %p1505_p8 }
  0x1a   :  { %1513 = shalt.err (!%p1510_p10)
}
  0x1b   :  { %s1514_s1 = scalar_lea.vmem %s19_s30, 896  ;;  %p1519_p12 = scmp.lt.s32.totalorder %s19_s30, %s19_s30 }
  0x1c   :  { %p1515_p11 = scmp.ne.s32.totalorder %s19_s30, %s1514_s1  ;;  %p1520_p13 = scmp.lt.s32.totalorder %s1514_s1, %s1514_s1 }
  0x1e   :  { %p1521_p0 = por %p1520_p13, %p1519_p12 }
  0x20   :  { %p1522_p1 = pnand %p1521_p0, %p1515_p11 }
  0x22   :  { %1525 = shalt.err (!%p1522_p1)
}
  0x23   :  { %21 = dma.hbm_to_vmem [thread:$0]  %s1723_s0, 896, %s19_s30, [#allocation3]  }
  0x24   :  { %s1526_s18 = scalar_lea.hbm %s1725_s2, 4096 }
  0x25   :  { %p1527_p2 = scmp.ne.s32.totalorder %s1725_s2, %s1526_s18  ;;  %p1530_p3 = scmp.lt.u32.totalorder %s1526_s18, %s1725_s2 }
  0x27   :  { %p1532_p4 = pnand %p1530_p3, %p1527_p2 }
  0x29   :  { %1535 = shalt.err (!%p1532_p4)
}
  0x2a   :  { %s1536_s23 = scalar_lea.vmem %s40_s6, 4096  ;;  %p1541_p6 = scmp.lt.s32.totalorder %s40_s6, %s40_s6 }
  0x2b   :  { %p1537_p5 = scmp.ne.s32.totalorder %s40_s6, %s1536_s23  ;;  %p1542_p7 = scmp.lt.s32.totalorder %s1536_s23, %s1536_s23 }
  0x2d   :  { %p1543_p8 = por %p1542_p7, %p1541_p6 }
  0x2f   :  { %p1544_p9 = pnand %p1543_p8, %p1537_p5 }
  0x31   :  { %1547 = shalt.err (!%p1544_p9)
}
  0x32   :  { %45 = dma.hbm_to_vmem [thread:$0]  %s1725_s2, 4096, %s40_s6, [#allocation6], %s1577_s25, %s1577_s25, %s1578_s26  }
  0x33   :  { %1570 = dma.done.wait [#allocation3], 896  }
  0x34   :  { %1571 = vsyncadd [#allocation3], 4294966400 }
  0x35   :  { %1572 = dma.done.wait [#allocation6], 10368  }
  0x36   :  { %1573 = vsyncadd [#allocation6], 4294956928  ;;  %v1397_v0 = vld [vmem:[#allocation5 + $0x40] sm:$0xff]   ;;  %v1401_v4 = vld [vmem:[#allocation5 + $0x48] sm:$0xff]   ;;  %v1581_v44 = vmov 0.0   ;;  %vm1582_vm0 = vmmov 0  }
  0x37   :  { %v1398_v1 = vld [vmem:[#allocation5] sm:$0xff]   ;;  %1199 = vmatprep.subr.bf16.mxu0 %v1397_v0  ;;  %v1402_v5 = vld [vmem:[#allocation5 + $0x8] sm:$0xff]   ;;  %v1405_v8 = vld [vmem:[#allocation5 + $0x50] sm:$0xff]   ;;  %vm469_vm1 = vcmask 130048  }
  0x38   :  { %v1399_v2 = vld [vmem:[#allocation5 + $0xc0] sm:$0xff]   ;;  %1200 = vmatpush3.bf16.msra.mxu0 %v1398_v1  ;;  %v1403_v6 = vld [vmem:[#allocation5 + $0xc8] sm:$0xff]   ;;  %v1406_v9 = vld [vmem:[#allocation5 + $0x10] sm:$0xff]  }
  0x39   :  { %v1400_v3 = vld [vmem:[#allocation5 + $0x80] sm:$0xff]   ;;  %1221 = vmatprep.subr.bf16.mxu1 %v1399_v2  ;;  %1201 = vmatprep.subr.bf16.mxu0 %v1401_v4  ;;  %v1404_v7 = vld [vmem:[#allocation5 + $0x88] sm:$0xff]   ;;  %v1407_v10 = vld [vmem:[#allocation5 + $0xd0] sm:$0xff]  }
  0x3a   :  { %1222 = vmatpush3.bf16.msra.mxu1 %v1400_v3  ;;  %v1408_v11 = vld [vmem:[#allocation5 + $0x90] sm:$0xff]   ;;  %v1409_v12 = vld [vmem:[#allocation5 + $0x58] sm:$0xff]   ;;  %v1413_v16 = vld [vmem:[#allocation5 + $0x60] sm:$0xff]  }
  0x3b   :  { %1223 = vmatprep.subr.bf16.mxu1 %v1403_v6  ;;  %v1410_v13 = vld [vmem:[#allocation5 + $0x18] sm:$0xff]   ;;  %v1414_v17 = vld [vmem:[#allocation5 + $0x20] sm:$0xff]   ;;  %v1417_v20 = vld [vmem:[#allocation5 + $0x68] sm:$0xff]  }
  0x3c   :  { %1202 = vmatpush3.bf16.msra.mxu0 %v1402_v5  ;;  %v1411_v14 = vld [vmem:[#allocation5 + $0xd8] sm:$0xff]   ;;  %v1415_v18 = vld [vmem:[#allocation5 + $0xe0] sm:$0xff]   ;;  %v1418_v21 = vld [vmem:[#allocation5 + $0x28] sm:$0xff]  }
  0x3d   :  { %1203 = vmatprep.subr.bf16.mxu0 %v1405_v8  ;;  %v1412_v15 = vld [vmem:[#allocation5 + $0x98] sm:$0xff]   ;;  %v1416_v19 = vld [vmem:[#allocation5 + $0xa0] sm:$0xff]   ;;  %v1419_v22 = vld [vmem:[#allocation5 + $0xe8] sm:$0xff]  }
  0x3e   :  { %1224 = vmatpush3.bf16.msra.mxu1 %v1404_v7  ;;  %v1420_v23 = vld [vmem:[#allocation5 + $0xa8] sm:$0xff]   ;;  %v1421_v24 = vld [vmem:[#allocation5 + $0x70] sm:$0xff]   ;;  %v1425_v28 = vld [vmem:[#allocation5 + $0x78] sm:$0xff]  }
  0x3f   :  { %1225 = vmatprep.subr.bf16.mxu1 %v1407_v10  ;;  %v1422_v25 = vld [vmem:[#allocation5 + $0x30] sm:$0xff]   ;;  %v1426_v29 = vld [vmem:[#allocation5 + $0x38] sm:$0xff]   ;;  %v58_v34 = vld [vmem:[#allocation2] sm:$0xff] }
  0x40   :  { %1204 = vmatpush3.bf16.msra.mxu0 %v1406_v9  ;;  %v1423_v26 = vld [vmem:[#allocation5 + $0xf0] sm:$0xff]   ;;  %v1427_v30 = vld [vmem:[#allocation5 + $0xf8] sm:$0xff]   ;;  %v65_v35 = vpack.c.bf16 %v58_v34, %v58_v34  ;;  %v1429_v36 = vld [vmem:[#allocation5 + $0x140] sm:$0xff]  }
  0x41   :  { %1205 = vmatprep.subr.bf16.mxu0 %v1409_v12  ;;  %v1424_v27 = vld [vmem:[#allocation5 + $0xb0] sm:$0xff]   ;;  %v1428_v33 = vld [vmem:[#allocation5 + $0xb8] sm:$0xff]   ;;  %v61_v37 = vld [vmem:[#allocation2 + $0x18] sm:$0xff] }
  0x42   :  { %1226 = vmatpush3.bf16.msra.mxu1 %v1408_v11  ;;  %v59_v31 = vld [vmem:[#allocation2 + $0x8] sm:$0xff]  ;;  %v68_v38 = vpack.c.bf16 %v61_v37, %v61_v37  ;;  %v1430_v39 = vld [vmem:[#allocation5 + $0x100] sm:$0xff]   ;;  %v60_v40 = vld [vmem:[#allocation2 + $0x10] sm:$0xff] }
  0x43   :  { %1227 = vmatprep.subr.bf16.mxu1 %v1411_v14  ;;  %v66_v32 = vpack.c.bf16 %v59_v31, %v59_v31  ;;  %v67_v41 = vpack.c.bf16 %v60_v40, %v60_v40  ;;  %v1431_v42 = vld [vmem:[#allocation5 + $0x148] sm:$0xff]   ;;  %v1433_v45 = vld [vmem:[#allocation5 + $0x150] sm:$0xff]   ;;  %v1435_v47 = vld [vmem:[#allocation5 + $0x158] sm:$0xff]  }
  0x44   :  { %1206 = vmatpush3.bf16.msra.mxu0 %v1410_v13  ;;  %545 = vmatprep.mubr.bf16.mxu1 %v68_v38  ;;  %v1432_v43 = vld [vmem:[#allocation5 + $0x108] sm:$0xff]   ;;  %v1434_v46 = vld [vmem:[#allocation5 + $0x110] sm:$0xff]   ;;  %v1436_v48 = vld [vmem:[#allocation5 + $0x118] sm:$0xff]  }
  0x45   :  { %1207 = vmatprep.subr.bf16.mxu0 %v1413_v16  ;;  %505 = vmatprep.mubr.bf16.mxu0 %v66_v32  ;;  %v1437_v49 = vld [vmem:[#allocation5 + $0x160] sm:$0xff]   ;;  %v1439_v51 = vld [vmem:[#allocation5 + $0x168] sm:$0xff]   ;;  %v63_v54 = vld [vmem:[#allocation2 + $0x28] sm:$0xff] }
  0x46   :  { %1228 = vmatpush3.bf16.msra.mxu1 %v1412_v15  ;;  %v1438_v50 = vld [vmem:[#allocation5 + $0x120] sm:$0xff]   ;;  %v1440_v52 = vld [vmem:[#allocation5 + $0x128] sm:$0xff]   ;;  %v1441_v55 = vld [vmem:[#allocation5 + $0x170] sm:$0xff]   ;;  %v70_v56 = vpack.c.bf16 %v63_v54, %v63_v54 }
  0x47   :  { %1229 = vmatprep.subr.bf16.mxu1 %v1415_v18  ;;  %v1445_v53 = vld [vmem:[#allocation5 + $0x180] sm:$0xff]   ;;  %v64_v57 = vld [vmem:[#allocation2 + $0x30] sm:$0xff]  ;;  %v1442_v59 = vld [vmem:[#allocation5 + $0x130] sm:$0xff]  }
  0x48   :  { %1208 = vmatpush3.bf16.msra.mxu0 %v1414_v17  ;;  %v71_v58 = vpack.c.bf16 %v64_v57, %v64_v57  ;;  %v1443_v60 = vld [vmem:[#allocation5 + $0x178] sm:$0xff]   ;;  %v62_v62 = vld [vmem:[#allocation2 + $0x20] sm:$0xff]  ;;  %v1447_v1 = vld [vmem:[#allocation7 + $0x8] sm:$0xff]  }
  0x49   :  { %1209 = vmatprep.subr.bf16.mxu0 %v1417_v20  ;;  %v1444_v61 = vld [vmem:[#allocation5 + $0x138] sm:$0xff]   ;;  %v69_v63 = vpack.c.bf16 %v62_v62, %v62_v62  ;;  %v1446_v0 = vld [vmem:[#allocation7] sm:$0xff]   ;;  %v1449_v3 = vld [vmem:[#allocation7 + $0x18] sm:$0xff]  }
  0x4a   :  { %1230 = vmatpush3.bf16.msra.mxu1 %v1416_v19  ;;  %v1448_v2 = vld [vmem:[#allocation7 + $0x10] sm:$0xff]   ;;  %v1450_v4 = vld [vmem:[#allocation7 + $0x20] sm:$0xff]   ;;  %v1451_v5 = vld [vmem:[#allocation7 + $0x28] sm:$0xff]  }
  0x4b   :  { %1231 = vmatprep.subr.bf16.mxu1 %v1419_v22  ;;  %v1452_v6 = vld [vmem:[#allocation7 + $0x30] sm:$0xff]   ;;  %v1453_v7 = vld [vmem:[#allocation7 + $0x38] sm:$0xff]   ;;  %v1454_v8 = vld [vmem:[#allocation7 + $0x40] sm:$0xff]  }
  0x4c   :  { %1210 = vmatpush3.bf16.msra.mxu0 %v1418_v21  ;;  %v1455_v9 = vld [vmem:[#allocation7 + $0x48] sm:$0xff]   ;;  %v1456_v10 = vld [vmem:[#allocation7 + $0x50] sm:$0xff]   ;;  %v1457_v11 = vld [vmem:[#allocation7 + $0x58] sm:$0xff]  }
  0x4d   :  { %1211 = vmatprep.subr.bf16.mxu0 %v1421_v24  ;;  %v1458_v12 = vld [vmem:[#allocation7 + $0x60] sm:$0xff]   ;;  %v1459_v13 = vld [vmem:[#allocation7 + $0x68] sm:$0xff]   ;;  %v1460_v40 = vld [vmem:[#allocation7 + $0x70] sm:$0xff]  }
  0x4e   :  { %1232 = vmatpush3.bf16.msra.mxu1 %v1420_v23  ;;  %v1112_v15 = vld [vmem:[%s1726_s3] ss:$0 sm:$0xff]  ;;  %v1468_v57 = vld [vmem:[#allocation7 + $0xb0] sm:$0xff]   ;;  %v1473_v62 = vld [vmem:[#allocation7 + $0xd8] sm:$0xff]  }
  0x4f   :  { %1233 = vmatprep.subr.bf16.mxu1 %v1423_v26 }
  0x50   :  { %1212 = vmatpush3.bf16.msra.mxu0 %v1422_v25 }
  0x51   :  { %1213 = vmatprep.subr.bf16.mxu0 %v1425_v28 }
  0x52   :  { %1234 = vmatpush3.bf16.msra.mxu1 %v1424_v27 }
  0x53   :  { %1235 = vmatprep.subr.bf16.mxu1 %v1427_v30 }
  0x54   :  { %1214 = vmatpush3.bf16.msra.mxu0 %v1426_v29 }
  0x55   :  { %1243 = vmatprep.subr.bf16.mxu0 %v1429_v36 }
  0x56   :  { %1236 = vmatpush3.bf16.msra.mxu1 %v1428_v33 }
  0x57   :  { %506 = vmatmul.mubr.bf16.vlgmr.msra.gmra.mrb[0].mxu0 %v65_v35  ;;  %1303 = vmatprep.subr.bf16.mxu1 %v1581_v44 }
  0x58   :  { %1244 = vmatpush3.bf16.msra.mxu0 %v1430_v39  ;;  %585 = vmatprep.mubr.bf16.mxu0 %v70_v56 }
  0x59   :  { %546 = vmatmul.mubr.bf16.vlgmr.msra.gmra.mrb[0].mxu1 %v67_v41  ;;  %1245 = vmatprep.subr.bf16.mxu0 %v1431_v42  ;;  %v1461_v41 = vld [vmem:[#allocation7 + $0x78] sm:$0xff]   ;;  %v1462_v42 = vld [vmem:[#allocation7 + $0x80] sm:$0xff]  }
  0x5a   :  { %1305 = vmatprep.mubr.msk.bf16.mxu1 %vm1582_vm0, %v1581_v44  ;;  %1304 = vmatpush3.bf16.msra.mxu1 %v1445_v53 }
  0x5b   :  { %1309 = vmatprep.subr.bf16.mxu1 %v1581_v44 }
  0x5c   :  { %1246 = vmatpush3.bf16.msra.mxu0 %v1432_v43  ;;  %v1463_v43 = vld [vmem:[#allocation7 + $0x88] sm:$0xff]  }
  0x5d   :  { %1247 = vmatprep.subr.bf16.mxu0 %v1433_v45  ;;  %v1464_v45 = vld [vmem:[#allocation7 + $0x90] sm:$0xff]  }
  0x60   :  { %1248 = vmatpush3.bf16.msra.mxu0 %v1434_v46  ;;  %v1465_v46 = vld [vmem:[#allocation7 + $0x98] sm:$0xff]  }
  0x61   :  { %1249 = vmatprep.subr.bf16.mxu0 %v1435_v47  ;;  %1306 = vmatmul.mubr.msk.bf16.vlgmr.msra.gmra.mrb[4].mxu1 %vm469_vm1, %v71_v58  ;;  %v1466_v47 = vld [vmem:[#allocation7 + $0xa0] sm:$0xff]   ;;  %v1469_v58 = vld [vmem:[#allocation7 + $0xb8] sm:$0xff]  }
  0x62   :  { %1325 = vmatprep.mubr.msk.bf16.mxu1 %vm1582_vm0, %v1581_v44  ;;  %1310 = vmatpush3.bf16.msra.mxu1 %v1446_v0  ;;  %v1475_v0 = vld [vmem:[#allocation7 + $0xe8] sm:$0xff]  }
  0x63   :  { %1311 = vmatprep.subr.bf16.mxu1 %v1581_v44 }
  0x64   :  { %1250 = vmatpush3.bf16.msra.mxu0 %v1436_v48  ;;  %v1467_v48 = vld [vmem:[#allocation7 + $0xa8] sm:$0xff]  }
  0x65   :  { %1251 = vmatprep.subr.bf16.mxu0 %v1437_v49  ;;  %v1163_v49 = vld [vmem:[%s1726_s3 + $0x1] ss:$0 sm:$0xff] }
  0x66   :  { %1312 = vmatpush3.bf16.msra.mxu1 %v1447_v1  ;;  %v1172_v1 = vld [vmem:[%s1726_s3 + $0x2] ss:$0 sm:$0xff] }
  0x67   :  { %1313 = vmatprep.subr.bf16.mxu1 %v1581_v44 }
  0x68   :  { %1252 = vmatpush3.bf16.msra.mxu0 %v1438_v50 }
  0x69   :  { %1253 = vmatprep.subr.bf16.mxu0 %v1439_v51 }
  0x6a   :  { %1314 = vmatpush3.bf16.msra.mxu1 %v1448_v2 }
  0x6b   :  { %1315 = vmatprep.subr.bf16.mxu1 %v1581_v44 }
  0x6c   :  { %1254 = vmatpush3.bf16.msra.mxu0 %v1440_v52 }
  0x6d   :  { %1255 = vmatprep.subr.bf16.mxu0 %v1441_v55 }
  0x6e   :  { %1316 = vmatpush3.bf16.msra.mxu1 %v1449_v3 }
  0x6f   :  { %1317 = vmatprep.subr.bf16.mxu1 %v1581_v44 }
  0x70   :  { %1256 = vmatpush3.bf16.msra.mxu0 %v1442_v59  ;;  %v1470_v59 = vld [vmem:[#allocation7 + $0xc0] sm:$0xff]  }
  0x71   :  { %1257 = vmatprep.subr.bf16.mxu0 %v1443_v60  ;;  %v1471_v60 = vld [vmem:[#allocation7 + $0xc8] sm:$0xff]  }
  0x72   :  { %1318 = vmatpush3.bf16.msra.mxu1 %v1450_v4 }
  0x73   :  { %1319 = vmatprep.subr.bf16.mxu1 %v1581_v44 }
  0x74   :  { %1258 = vmatpush3.bf16.msra.mxu0 %v1444_v61  ;;  %v1472_v61 = vld [vmem:[#allocation7 + $0xd0] sm:$0xff]  }
  0x75   :  { %1329 = vmatprep.subr.bf16.mxu0 %v1581_v44 }
  0x76   :  { %1320 = vmatpush3.bf16.msra.mxu1 %v1451_v5 }
  0x77   :  { %586 = vmatmul.mubr.bf16.vlgmr.msra.gmra.mrb[4].mxu0 %v69_v63  ;;  %1321 = vmatprep.subr.bf16.mxu1 %v1581_v44  ;;  %v1474_v63 = vld [vmem:[#allocation7 + $0xe0] sm:$0xff]  }
  0x78   :  { %1345 = vmatprep.mubr.msk.bf16.mxu0 %vm1582_vm0, %v1581_v44  ;;  %1330 = vmatpush3.bf16.msra.mxu0 %v1454_v8 }
  0x79   :  { %1331 = vmatprep.subr.bf16.mxu0 %v1581_v44 }
  0x7a   :  { %1322 = vmatpush3.bf16.msra.mxu1 %v1452_v6 }
  0x7b   :  { %1323 = vmatprep.subr.bf16.mxu1 %v1581_v44 }
  0x7c   :  { %1332 = vmatpush3.bf16.msra.mxu0 %v1455_v9  ;;  %v1476_v9 = vld [vmem:[#allocation7 + $0xf0] sm:$0xff]  }
  0x7d   :  { %1333 = vmatprep.subr.bf16.mxu0 %v1581_v44 }
  0x7e   :  { %1324 = vmatpush3.bf16.msra.mxu1 %v1453_v7 }
  0x7f   :  { %1349 = vmatprep.subr.bf16.mxu1 %v1581_v44 }
  0x80   :  { %1334 = vmatpush3.bf16.msra.mxu0 %v1456_v10  ;;  %v1477_v10 = vld [vmem:[#allocation7 + $0xf8] sm:$0xff]  }
  0x81   :  { %1335 = vmatprep.subr.bf16.mxu0 %v1581_v44 }
  0x84   :  { %1336 = vmatpush3.bf16.msra.mxu0 %v1457_v11  ;;  %v1181_v11 = vld [vmem:[%s1726_s3 + $0x3] ss:$0 sm:$0xff] }
  0x85   :  { %1337 = vmatprep.subr.bf16.mxu0 %v1581_v44 }
  0x88   :  { %1338 = vmatpush3.bf16.msra.mxu0 %v1458_v12 }
  0x89   :  { %1339 = vmatprep.subr.bf16.mxu0 %v1581_v44 }
  0x8c   :  { %1340 = vmatpush3.bf16.msra.mxu0 %v1459_v13 }
  0x8d   :  { %1341 = vmatprep.subr.bf16.mxu0 %v1581_v44 }
  0x90   :  { %1342 = vmatpush3.bf16.msra.mxu0 %v1460_v40 }
  0x91   :  { %1343 = vmatprep.subr.bf16.mxu0 %v1581_v44 }
  0x94   :  { %1344 = vmatpush3.bf16.msra.mxu0 %v1461_v41 }
  0x95   :  { %1369 = vmatprep.subr.bf16.mxu0 %v1581_v44 }
 0x12a   :  { %v1215_v14 = vpop.f32.mrb[0].mxu0 }
 0x12b   :  { %v1216_v16 = vpop.f32.mrb[1].mxu0 }
 0x12c   :  { %v1217_v17 = vadd.f32 %v1216_v16, %v1215_v14  ;;  %v1218_v18 = vpop.f32.mrb[2].mxu0  ;;  %v1237_v19 = vpop.f32.mrb[0].mxu1 }
 0x12d   :  { %v1219_v20 = vpop.f32.mrb[3].mxu0  ;;  %v1238_v22 = vpop.f32.mrb[1].mxu1 }
 0x12e   :  { %v508_v21 = vadd.f32 %v1217_v17, %v1112_v15  ;;  %v1239_v23 = vadd.f32 %v1238_v22, %v1237_v19  ;;  %v1240_v24 = vpop.f32.mrb[2].mxu1  ;;  %v1080_v19 = vlaneseq }
 0x12f   :  { %v1241_v25 = vpop.f32.mrb[3].mxu1 }
 0x130   :  { %v548_v26 = vadd.f32 %v1239_v23, %v508_v21  ;;  %v1081_v20 = vand.u32 127, %v1080_v19 }
 0x132   :  { %vm1082_vm2 = vcmp.lt.s32.totalorder %v1081_v20, 10 }
 0x134   :  { %v627_v27 = vpop.f32.mrb[4].mxu1 }
 0x135   :  { %v1307_v28 = vpop.f32.mrb[5].mxu1 }
 0x136   :  { %v630_v29 = vpop.f32.mrb[6].mxu1 }
 0x137   :  { %v1308_v30 = vpop.f32.mrb[7].mxu1 }
 0x14a   :  { %v1259_v31 = vpop.f32.mrb[4].mxu0 }
 0x14b   :  { %v1260_v32 = vpop.f32.mrb[5].mxu0 }
 0x14c   :  { %v1261_v33 = vadd.f32 %v1260_v32, %v1259_v31  ;;  %v1262_v34 = vpop.f32.mrb[6].mxu0 }
 0x14d   :  { %v1263_v35 = vpop.f32.mrb[7].mxu0 }
 0x14e   :  { %v588_v36 = vadd.f32 %v1261_v33, %v548_v26 }
 0x150   :  { %v628_v37 = vadd.f32 %v627_v27, %v588_v36 }
 0x152   :  { %v633_v38 = vmax.f32 %v628_v37, 0.0 }
 0x154   :  { %v634_v39 = vpack.c.bf16 %v633_v38, %v633_v38 }
 0x156   :  { %1326 = vmatmul.mubr.bf16.vlgmr.msra.gmra.mrb[8].mxu1 %v634_v39 }
 0x157   :  { %1365 = vmatprep.mubr.msk.bf16.mxu1 %vm1582_vm0, %v1581_v44  ;;  %1350 = vmatpush3.bf16.msra.mxu1 %v1462_v42 }
 0x158   :  { %1351 = vmatprep.subr.bf16.mxu1 %v1581_v44 }
 0x15b   :  { %1352 = vmatpush3.bf16.msra.mxu1 %v1463_v43 }
 0x15c   :  { %1353 = vmatprep.subr.bf16.mxu1 %v1581_v44 }
 0x15f   :  { %1354 = vmatpush3.bf16.msra.mxu1 %v1464_v45 }
 0x160   :  { %1355 = vmatprep.subr.bf16.mxu1 %v1581_v44 }
 0x163   :  { %1356 = vmatpush3.bf16.msra.mxu1 %v1465_v46 }
 0x164   :  { %1357 = vmatprep.subr.bf16.mxu1 %v1581_v44 }
 0x167   :  { %1358 = vmatpush3.bf16.msra.mxu1 %v1466_v47 }
 0x168   :  { %1359 = vmatprep.subr.bf16.mxu1 %v1581_v44 }
 0x16b   :  { %1360 = vmatpush3.bf16.msra.mxu1 %v1467_v48 }
 0x16c   :  { %1361 = vmatprep.subr.bf16.mxu1 %v1581_v44 }
 0x16f   :  { %1362 = vmatpush3.bf16.msra.mxu1 %v1468_v57 }
 0x170   :  { %1363 = vmatprep.subr.bf16.mxu1 %v1581_v44 }
 0x173   :  { %1364 = vmatpush3.bf16.msra.mxu1 %v1469_v58 }
 0x229   :  { %v738_v50 = vpop.f32.mrb[8].mxu1 }
 0x22a   :  { %v739_v51 = vadd.f32 %v1163_v49, %v738_v50  ;;  %v1327_v52 = vpop.f32.mrb[9].mxu1 }
 0x22b   :  { %v741_v53 = vpop.f32.mrb[10].mxu1 }
 0x22c   :  { %v744_v54 = vmax.f32 %v739_v51, 0.0  ;;  %v1328_v55 = vpop.f32.mrb[11].mxu1 }
 0x22e   :  { %v745_v56 = vpack.c.bf16 %v744_v54, %v744_v54 }
 0x230   :  { %1346 = vmatmul.mubr.bf16.vlgmr.msra.gmra.mrb[8].mxu0 %v745_v56 }
 0x231   :  { %1385 = vmatprep.mubr.msk.bf16.mxu0 %vm1582_vm0, %v1581_v44  ;;  %1370 = vmatpush3.bf16.msra.mxu0 %v1470_v59 }
 0x232   :  { %1371 = vmatprep.subr.bf16.mxu0 %v1581_v44 }
 0x235   :  { %1372 = vmatpush3.bf16.msra.mxu0 %v1471_v60 }
 0x236   :  { %1373 = vmatprep.subr.bf16.mxu0 %v1581_v44 }
 0x239   :  { %1374 = vmatpush3.bf16.msra.mxu0 %v1472_v61 }
 0x23a   :  { %1375 = vmatprep.subr.bf16.mxu0 %v1581_v44 }
 0x23d   :  { %1376 = vmatpush3.bf16.msra.mxu0 %v1473_v62 }
 0x23e   :  { %1377 = vmatprep.subr.bf16.mxu0 %v1581_v44 }
 0x241   :  { %1378 = vmatpush3.bf16.msra.mxu0 %v1474_v63 }
 0x242   :  { %1379 = vmatprep.subr.bf16.mxu0 %v1581_v44 }
 0x245   :  { %1380 = vmatpush3.bf16.msra.mxu0 %v1475_v0 }
 0x246   :  { %1381 = vmatprep.subr.bf16.mxu0 %v1581_v44 }
 0x249   :  { %1382 = vmatpush3.bf16.msra.mxu0 %v1476_v9 }
 0x24a   :  { %1383 = vmatprep.subr.bf16.mxu0 %v1581_v44  ;;  %v1190_v44 = vld [vmem:[%s1726_s3 + $0x4] ss:$0 sm:$0xff]  ;;  %s1583_s3 = smov [#allocation8]  }
 0x24b   :  { %s1102_s8 = sshll.u32 %s1583_s3, 4  ;;  %s1103_s8 = int_to_ptr.vmem [resolvable:$true] %s1102_s8 }
 0x24c   :  { %s1548_s9 = scalar_lea.vmem %s1103_s8, 128  ;;  %p1553_p11 = scmp.lt.s32.totalorder %s1103_s8, %s1103_s8 }
 0x24d   :  { %1384 = vmatpush3.bf16.msra.mxu0 %v1477_v10  ;;  %p1549_p10 = scmp.ne.s32.totalorder %s1103_s8, %s1548_s9  ;;  %p1554_p12 = scmp.lt.s32.totalorder %s1548_s9, %s1548_s9 }
 0x24f   :  { %p1555_p13 = por %p1554_p12, %p1553_p11 }
 0x251   :  { %p1556_p0 = pnand %p1555_p13, %p1549_p10 }
 0x303   :  { %v850_v2 = vpop.f32.mrb[8].mxu0 }
 0x304   :  { %v851_v3 = vadd.f32 %v1172_v1, %v850_v2  ;;  %v1347_v4 = vpop.f32.mrb[9].mxu0 }
 0x305   :  { %v853_v5 = vpop.f32.mrb[10].mxu0 }
 0x306   :  { %v856_v6 = vmax.f32 %v851_v3, 0.0  ;;  %v1348_v7 = vpop.f32.mrb[11].mxu0 }
 0x308   :  { %v857_v8 = vpack.c.bf16 %v856_v6, %v856_v6 }
 0x30a   :  { %1366 = vmatmul.mubr.bf16.vlgmr.msra.gmra.mrb[12].mxu1 %v857_v8 }
 0x3dd   :  { %v962_v12 = vpop.f32.mrb[12].mxu1 }
 0x3de   :  { %v963_v13 = vadd.f32 %v1181_v11, %v962_v12  ;;  %v1367_v14 = vpop.f32.mrb[13].mxu1 }
 0x3df   :  { %v965_v15 = vpop.f32.mrb[14].mxu1 }
 0x3e0   :  { %v968_v16 = vmax.f32 %v963_v13, 0.0  ;;  %v1368_v17 = vpop.f32.mrb[15].mxu1 }
 0x3e2   :  { %v969_v18 = vpack.c.bf16 %v968_v16, %v968_v16 }
 0x3e4   :  { %1386 = vmatmul.mubr.bf16.vlgmr.msra.gmra.mrb[12].mxu0 %v969_v18 }
 0x4b7   :  { %v1074_v21 = vpop.f32.mrb[12].mxu0 }
 0x4b8   :  { %v1075_v22 = vadd.f32 %v1190_v44, %v1074_v21  ;;  %v1387_v23 = vpop.f32.mrb[13].mxu0 }
 0x4b9   :  { %v1077_v24 = vpop.f32.mrb[14].mxu0 }
 0x4ba   :  { %v1388_v25 = vpop.f32.mrb[15].mxu0  ;;  %v1083_v26 = vsel %vm1082_vm2, %v1075_v22, -inf }
 0x4bb   :  { %1084 = vmax.xlane.f32.xlu0 %v1083_v26 }
 0x548   :  { %v1085_v27 = vpop.xlane.xlu0 %1084 }
 0x549   :  { %v1086_v28 = vsub.f32 %v1083_v26, %v1085_v27 }
 0x54b   :  { %v1087_v29 = vmul.f32 1.442695, %v1086_v28 }
 0x54d   :  { %1478 = vpow2.f32 %v1087_v29 }
 0x557   :  { %v1479_v30 = vpop.eup %1478 }
 0x558   :  { %1089 = vadd.xlane.f32.xlu0 %v1479_v30 }
 0x5e5   :  { %v1090_v31 = vpop.xlane.xlu0 %1089 }
 0x5e6   :  { %1480 = vlog2.f32 %v1090_v31 }
 0x5f0   :  { %v1481_v32 = vpop.eup %1480 }
 0x5f1   :  { %v1092_v33 = vmul.f32 0.6931472, %v1481_v32 }
 0x5f3   :  { %v1093_v34 = vsub.f32 %v1086_v28, %v1092_v33 }
 0x5f5   :  { %v1094_v35 = vsel %vm1082_vm2, %v1093_v34, 0.0 }
 0x5f6   :  { %1095 = vst [vmem:[#allocation8] sm:$0xff] %v1094_v35 }
 0x5f7   :  { %1559 = shalt.err (!%p1556_p0)
}
 0x5f8   :  { %s1560_s12 = scalar_lea.hbm %s1727_s4, 128 }
 0x5f9   :  { %p1561_p1 = scmp.ne.s32.totalorder %s1727_s4, %s1560_s12  ;;  %p1564_p2 = scmp.lt.u32.totalorder %s1560_s12, %s1727_s4 }
 0x5fb   :  { %p1566_p3 = pnand %p1564_p2, %p1561_p1 }
 0x5fd   :  { %1569 = shalt.err (!%p1566_p3)
}
 0x5fe   :  { %1105 = dma.vmem_to_hbm [thread:$0]  %s1103_s8, 128, %s1727_s4, [#allocation4]  }
 0x5ff   :  { %1574 = dma.done.wait [#allocation4], 128  }
 0x600   :  { %1575 = vsyncadd [#allocation4], 4294967168 }
 0x601   :  { %1109 = vsyncpa [#allocation3], 1 }
 0x602   :  { %1110 = vsyncpa [#allocation6], 1 }
 0x603   :  { %1111 = vsyncpa [#allocation4], 1 }

</bundles_post_ra>
